<compile_context>
chip_gen: v7x
topology: tpu7x:2x2x1
jax: 0.10.0
libtpu: 0.0.40
codegen_flags: <defaults>
</compile_context>

<pallas_src>
import functools

import jax
import jax.numpy as jnp
from jax.experimental import pallas as pl
from jax.experimental.pallas import tpu as pltpu

SUBLANE_F32 = 8
SUBLANE_BF16 = 16


def _round_up(x, m):
    return (x + m - 1) // m * m


def gail_disc_kernel(state_ref, action_ref, w1s_ref, w1a_ref, b1_ref,
                     w2_ref, b2_ref, w3r_ref, b3_ref, d_ref, logit_ref,
                     *, compute_dtype):
    # state_ref : (TB, S)      features (f32 or bf16)
    # action_ref: (TB, 1)      int32 action ids
    # w1s_ref   : (S, H)       state part of layer-1 weight
    # w1a_ref   : (A_pad, H)   action (one-hot) part of layer-1 weight, A_pad = round_up(A, 8)
    # b1/b2     : (1, H) f32 ; w2: (H, H)
    # w3r_ref   : (1, H) f32   final weight as a row vector; b3: (1, 1) f32
    # d_ref     : (TB, 1) f32  sigmoid output
    # logit_ref : (TB, 1) f32  pre-sigmoid logit == predict_reward
    x = state_ref[...].astype(compute_dtype)             # (TB, S)

    # Build one_hot(action) on-chip (VPU) instead of DMA'ing it from HBM.
    a = action_ref[...]                                   # (TB, 1) int32
    a_pad = w1a_ref.shape[0]
    onehot = (jax.lax.broadcasted_iota(jnp.int32, (x.shape[0], a_pad), 1)
              == a).astype(compute_dtype)                 # (TB, A_pad)

    # Layer 1: cat([state, onehot]) @ W1 == state @ W1_s + onehot @ W1_a
    z1 = (jnp.dot(x, w1s_ref[...].astype(compute_dtype),
                  preferred_element_type=jnp.float32)
          + jnp.dot(onehot, w1a_ref[...].astype(compute_dtype),
                    preferred_element_type=jnp.float32)
          + b1_ref[...])
    h1 = jnp.tanh(z1)

    # Layer 2
    z2 = (jnp.dot(h1.astype(compute_dtype), w2_ref[...].astype(compute_dtype),
                  preferred_element_type=jnp.float32) + b2_ref[...])
    h2 = jnp.tanh(z2)

    # Layer 3 (single output unit): f32 multiply + lane-sum instead of an
    # N=1 matmul / 128-lane padded store. Reward log(D)-log1p(-D) == z3.
    z3 = jnp.sum(h2 * w3r_ref[...], axis=1, keepdims=True) + b3_ref[...]  # (TB,1)
    logit_ref[...] = z3
    d_ref[...] = 1.0 / (1.0 + jnp.exp(-z3))   # exact sigmoid, 1 lane only


def prepare_params(params, state_size, action_size, state_only=False):
    """Split / lightly-pad PyTorch-layout params ((in,out) weights) for the kernel."""
    w1, b1, w2, b2, w3, b3 = params
    H = w1.shape[1]
    a_pad = _round_up(max(action_size, 1), SUBLANE_F32)   # 8, not 128
    w1s = jnp.asarray(w1[:state_size], jnp.float32)       # (S, H), no lane pad
    if state_only:
        w1a = jnp.zeros((a_pad, H), jnp.float32)
    else:
        w1a = jnp.zeros((a_pad, H), jnp.float32).at[:action_size].set(
            w1[state_size:state_size + action_size])
    w3r = jnp.asarray(w3, jnp.float32).reshape(1, H)       # row vector
    b3r = jnp.asarray(b3, jnp.float32).reshape(1, 1)
    return (w1s, w1a,
            jnp.asarray(b1, jnp.float32).reshape(1, H),
            jnp.asarray(w2, jnp.float32),
            jnp.asarray(b2, jnp.float32).reshape(1, H),
            w3r, b3r)


@functools.partial(jax.jit, static_argnames=("block_b", "compute_dtype"))
def _gail_forward_impl(state, action, kernel_params, *, block_b=1024,
                       compute_dtype=jnp.float32):
    """Returns (D, logit), each shape (B,), float32."""
    w1s, w1a, b1, w2, b2, w3r, b3r = kernel_params
    B, S = state.shape

    # Batch tiling: multiple of 8 sublanes (16 for sub-32-bit compute dtypes).
    sub = SUBLANE_BF16 if jnp.dtype(compute_dtype).itemsize < 4 else SUBLANE_F32
    tb = _round_up(min(block_b, _round_up(B, sub)), sub)
    # Prefer >= 2 grid steps so v7x's two TensorCores both get a share of the
    # "parallel" batch axis (no-op on single-TC v5e/v6e).
    if _round_up(B, tb) // tb < 2:
        tb = max(sub, min(tb, _round_up((B + 1) // 2, sub)))
    b_pad = _round_up(B, tb)

    # bf16 MXU feeding (safe on v5e/v6e/v7x: only MXU operands are narrowed,
    # tanh/exp and accumulation stay f32). Batch-only padding; all of this
    # stays inside the same jit as the pallas_call so XLA can fuse it.
    xs = state.astype(compute_dtype if jnp.dtype(compute_dtype)
                      != jnp.dtype(jnp.float32) else jnp.float32)
    if jnp.dtype(compute_dtype) != jnp.dtype(jnp.float32):
        w1s = w1s.astype(compute_dtype)
        w1a = w1a.astype(compute_dtype)
        w2 = w2.astype(compute_dtype)
    act = action.astype(jnp.int32).reshape(B, 1)
    if b_pad != B:
        xs = jnp.pad(xs, ((0, b_pad - B), (0, 0)))
        act = jnp.pad(act, ((0, b_pad - B), (0, 0)))

    const = lambda shape: pl.BlockSpec(shape, lambda i, _s=shape: (0,) * len(_s))

    d, logit = pl.pallas_call(
        functools.partial(gail_disc_kernel, compute_dtype=compute_dtype),
        out_shape=(jax.ShapeDtypeStruct((b_pad, 1), jnp.float32),
                   jax.ShapeDtypeStruct((b_pad, 1), jnp.float32)),
        grid=(b_pad // tb,),
        in_specs=[
            pl.BlockSpec((tb, S), lambda i: (i, 0)),   # state tiles (unpadded S)
            pl.BlockSpec((tb, 1), lambda i: (i, 0)),   # action ids
            const(w1s.shape), const(w1a.shape), const(b1.shape),
            const(w2.shape), const(b2.shape),
            const(w3r.shape), const(b3r.shape),
        ],
        out_specs=(pl.BlockSpec((tb, 1), lambda i: (i, 0)),
                   pl.BlockSpec((tb, 1), lambda i: (i, 0))),
        compiler_params=pltpu.CompilerParams(
            dimension_semantics=("parallel",)),
    )(xs, act, w1s, w1a, b1, w2, b2, w3r, b3r)

    return d[:B, 0], logit[:B, 0]


def gail_discriminator_forward(state, action, kernel_params, **kw):
    """D = discriminator(state, action), shape (B,), float32."""
    d, _ = _gail_forward_impl(state, action, kernel_params, **kw)
    return d


def gail_predict_reward(state, action, kernel_params, **kw):
    """log(D) - log1p(-D) == pre-sigmoid logit, taken directly from the kernel
    (fused; no recomputation and no f32 saturation for |logit| > ~17)."""
    _, logit = _gail_forward_impl(state, action, kernel_params, **kw)
    return logit


def init_params(key, in_features, hidden_size):
    """Deterministic init mimicking nn.Linear's U(-1/sqrt(fan_in), ...)."""
    ks = jax.random.split(key, 6)

    def lin(kw, kb, fi, fo):
        bound = 1.0 / jnp.sqrt(fi)
        w = jax.random.uniform(kw, (fi, fo), jnp.float32, -bound, bound)
        b = jax.random.uniform(kb, (1, fo), jnp.float32, -bound, bound)
        return w, b

    w1, b1 = lin(ks[0], ks[1], in_features, hidden_size)
    w2, b2 = lin(ks[2], ks[3], hidden_size, hidden_size)
    w3, b3 = lin(ks[4], ks[5], hidden_size, 1)
    return (w1, b1, w2, b2, w3, b3)


def _reference(state, action, params, action_size):
    w1, b1, w2, b2, w3, b3 = params
    onehot = jax.nn.one_hot(action, action_size, dtype=jnp.float32)
    x = jnp.concatenate([state, onehot], axis=1)
    h1 = jnp.tanh(x @ w1 + b1)
    h2 = jnp.tanh(h1 @ w2 + b2)
    logit = (h2 @ w3 + b3)[:, 0]
    return jax.nn.sigmoid(logit), logit


if __name__ == "__main__":
    batch = 64
    state_size = 16
    hidden_size = 32
    action_size = 6

    key = jax.random.PRNGKey(0)
    k_params, k_state, k_action = jax.random.split(key, 3)
    params = init_params(k_params, state_size + action_size, hidden_size)
    kernel_params = prepare_params(params, state_size, action_size)

    state = jax.random.normal(k_state, (batch, state_size), jnp.float32)
    action = jax.random.randint(k_action, (batch,), 0, action_size)

    d_ref, logit_ref = _reference(state, action, params, action_size)

    # f32 compute path (exact numerics).
    d = gail_discriminator_forward(state, action, kernel_params)
    jax.block_until_ready(d)
    assert d.shape == (batch,)
    assert jnp.allclose(d, d_ref, atol=1e-5, rtol=1e-5)
    assert bool(jnp.all((d > 0.0) & (d < 1.0)))

    # bf16 MXU feeding (fine on v5e/v6e/v7x) with f32 accumulation.
    d_bf16 = gail_discriminator_forward(state, action, kernel_params,
                                        compute_dtype=jnp.bfloat16)
    jax.block_until_ready(d_bf16)
    assert jnp.allclose(d_bf16, d_ref, atol=3e-2, rtol=3e-2)

    # predict_reward is the fused pre-sigmoid logit output of the same kernel.
    r = gail_predict_reward(state, action, kernel_params)
    jax.block_until_ready(r)
    assert jnp.allclose(r, logit_ref, atol=1e-4, rtol=1e-4)
    assert jnp.allclose(jax.nn.sigmoid(r), d, atol=1e-5, rtol=1e-5)

    print("KERNEL_OK")
</pallas_src>

<mosaic_0001>
module attributes {stable_mosaic.version = 11 : i64} {
  func.func @gail_disc_kernel(%arg0: i32, %arg1: memref<32x16xf32, #tpu.memory_space<vmem>>, %arg2: memref<32x1xi32, #tpu.memory_space<vmem>>, %arg3: memref<16x32xf32, #tpu.memory_space<vmem>>, %arg4: memref<8x32xf32, #tpu.memory_space<vmem>>, %arg5: memref<1x32xf32, #tpu.memory_space<vmem>>, %arg6: memref<32x32xf32, #tpu.memory_space<vmem>>, %arg7: memref<1x32xf32, #tpu.memory_space<vmem>>, %arg8: memref<1x32xf32, #tpu.memory_space<vmem>>, %arg9: memref<1x1xf32, #tpu.memory_space<vmem>>, %arg10: memref<32x1xf32, #tpu.memory_space<vmem>>, %arg11: memref<32x1xf32, #tpu.memory_space<vmem>>) attributes {dimension_semantics = [#tpu.dimension_semantics<parallel>], iteration_bounds = array<i64: 2>, scalar_prefetch = 0 : i64, scratch_operands = 0 : i64, tpu.core_type = #tpu.core_type<tc>, window_params = [{transform_indices = @transform_0, window_bounds = array<i64: 32, 16>}, {transform_indices = @transform_1, window_bounds = array<i64: 32, 1>}, {pipeline_mode = #tpu.pipeline_mode<synchronous>, transform_indices = @transform_2, window_bounds = array<i64: 16, 32>}, {pipeline_mode = #tpu.pipeline_mode<synchronous>, transform_indices = @transform_3, window_bounds = array<i64: 8, 32>}, {pipeline_mode = #tpu.pipeline_mode<synchronous>, transform_indices = @transform_4, window_bounds = array<i64: 1, 32>}, {pipeline_mode = #tpu.pipeline_mode<synchronous>, transform_indices = @transform_5, window_bounds = array<i64: 32, 32>}, {pipeline_mode = #tpu.pipeline_mode<synchronous>, transform_indices = @transform_6, window_bounds = array<i64: 1, 32>}, {pipeline_mode = #tpu.pipeline_mode<synchronous>, transform_indices = @transform_7, window_bounds = array<i64: 1, 32>}, {pipeline_mode = #tpu.pipeline_mode<synchronous>, transform_indices = @transform_8, window_bounds = array<i64: 1, 1>}, {transform_indices = @transform_9, window_bounds = array<i64: 32, 1>}, {transform_indices = @transform_10, window_bounds = array<i64: 32, 1>}]} {
    %c0 = arith.constant 0 : index
    %c0_0 = arith.constant 0 : index
    %0 = vector.load %arg1[%c0, %c0_0] : memref<32x16xf32, #tpu.memory_space<vmem>>, vector<32x16xf32>
    %c0_1 = arith.constant 0 : index
    %c0_2 = arith.constant 0 : index
    %1 = vector.load %arg2[%c0_1, %c0_2] : memref<32x1xi32, #tpu.memory_space<vmem>>, vector<32x1xi32>
    %2 = tpu.iota {dimensions = array<i32: 1>} : vector<32x8xi32>
    %3 = vector.broadcast %1 : vector<32x1xi32> to vector<32x8xi32>
    %4 = arith.cmpi eq, %2, %3 : vector<32x8xi32>
    %5 = arith.extui %4 : vector<32x8xi1> to vector<32x8xi32>
    %6 = arith.sitofp %5 : vector<32x8xi32> to vector<32x8xf32>
    %c0_3 = arith.constant 0 : index
    %c0_4 = arith.constant 0 : index
    %7 = vector.load %arg3[%c0_3, %c0_4] : memref<16x32xf32, #tpu.memory_space<vmem>>, vector<16x32xf32>
    %cst = arith.constant dense<0.000000e+00> : vector<32x32xf32>
    %8 = tpu.matmul %0, %7, %cst {dimension_numbers = #tpu.dot_dimension_numbers<[1], [0], [0], [1], [0, 0, 1, 1], [], []>} : vector<32x16xf32>, vector<16x32xf32>, vector<32x32xf32> -> vector<32x32xf32>
    %c0_5 = arith.constant 0 : index
    %c0_6 = arith.constant 0 : index
    %9 = vector.load %arg4[%c0_5, %c0_6] : memref<8x32xf32, #tpu.memory_space<vmem>>, vector<8x32xf32>
    %cst_7 = arith.constant dense<0.000000e+00> : vector<32x32xf32>
    %10 = tpu.matmul %6, %9, %cst_7 {dimension_numbers = #tpu.dot_dimension_numbers<[1], [0], [0], [1], [0, 0, 1, 1], [], []>} : vector<32x8xf32>, vector<8x32xf32>, vector<32x32xf32> -> vector<32x32xf32>
    %11 = arith.addf %8, %10 : vector<32x32xf32>
    %c0_8 = arith.constant 0 : index
    %c0_9 = arith.constant 0 : index
    %12 = vector.load %arg5[%c0_8, %c0_9] : memref<1x32xf32, #tpu.memory_space<vmem>>, vector<1x32xf32>
    %13 = vector.broadcast %12 : vector<1x32xf32> to vector<32x32xf32>
    %14 = arith.addf %11, %13 : vector<32x32xf32>
    %15 = math.tanh %14 : vector<32x32xf32>
    %c0_10 = arith.constant 0 : index
    %c0_11 = arith.constant 0 : index
    %16 = vector.load %arg6[%c0_10, %c0_11] : memref<32x32xf32, #tpu.memory_space<vmem>>, vector<32x32xf32>
    %cst_12 = arith.constant dense<0.000000e+00> : vector<32x32xf32>
    %17 = tpu.matmul %15, %16, %cst_12 {dimension_numbers = #tpu.dot_dimension_numbers<[1], [0], [0], [1], [0, 0, 1, 1], [], []>} : vector<32x32xf32>, vector<32x32xf32>, vector<32x32xf32> -> vector<32x32xf32>
    %c0_13 = arith.constant 0 : index
    %c0_14 = arith.constant 0 : index
    %18 = vector.load %arg7[%c0_13, %c0_14] : memref<1x32xf32, #tpu.memory_space<vmem>>, vector<1x32xf32>
    %19 = vector.broadcast %18 : vector<1x32xf32> to vector<32x32xf32>
    %20 = arith.addf %17, %19 : vector<32x32xf32>
    %21 = math.tanh %20 : vector<32x32xf32>
    %c0_15 = arith.constant 0 : index
    %c0_16 = arith.constant 0 : index
    %22 = vector.load %arg8[%c0_15, %c0_16] : memref<1x32xf32, #tpu.memory_space<vmem>>, vector<1x32xf32>
    %23 = vector.broadcast %22 : vector<1x32xf32> to vector<32x32xf32>
    %24 = arith.mulf %21, %23 : vector<32x32xf32>
    %cst_17 = arith.constant dense<0.000000e+00> : vector<32xf32>
    %25 = vector.multi_reduction <add>, %24, %cst_17 [1] : vector<32x32xf32> to vector<32xf32>
    %26 = vector.shape_cast %25 : vector<32xf32> to vector<32x1xf32>
    %c0_18 = arith.constant 0 : index
    %c0_19 = arith.constant 0 : index
    %27 = vector.load %arg9[%c0_18, %c0_19] : memref<1x1xf32, #tpu.memory_space<vmem>>, vector<1x1xf32>
    %28 = vector.broadcast %27 : vector<1x1xf32> to vector<32x1xf32>
    %29 = arith.addf %26, %28 : vector<32x1xf32>
    %c0_20 = arith.constant 0 : index
    %c0_21 = arith.constant 0 : index
    %30 = vector.load %arg11[%c0_20, %c0_21] : memref<32x1xf32, #tpu.memory_space<vmem>>, vector<32x1xf32>
    tpu.vector_store %arg11[%c0_20, %c0_21], %29 {strides = array<i32>} : memref<32x1xf32, #tpu.memory_space<vmem>>, vector<32x1xf32>,
    %cst_22 = arith.constant 0.000000e+00 : f32
    %31 = vector.broadcast %cst_22 : f32 to vector<32x1xf32>
    %32 = arith.subf %31, %29 : vector<32x1xf32>
    %33 = math.exp %32 : vector<32x1xf32>
    %cst_23 = arith.constant 1.000000e+00 : f32
    %34 = vector.broadcast %cst_23 : f32 to vector<32x1xf32>
    %35 = arith.addf %34, %33 : vector<32x1xf32>
    %cst_24 = arith.constant 1.000000e+00 : f32
    %36 = vector.broadcast %cst_24 : f32 to vector<32x1xf32>
    %37 = arith.divf %36, %35 : vector<32x1xf32>
    %c0_25 = arith.constant 0 : index
    %c0_26 = arith.constant 0 : index
    %38 = vector.load %arg10[%c0_25, %c0_26] : memref<32x1xf32, #tpu.memory_space<vmem>>, vector<32x1xf32>
    tpu.vector_store %arg10[%c0_25, %c0_26], %37 {strides = array<i32>} : memref<32x1xf32, #tpu.memory_space<vmem>>, vector<32x1xf32>,
    return
  }
  func.func @transform_0(%arg0: i32) -> (i32, i32) {
    %c0_i32 = arith.constant 0 : i32
    %c0_i32_0 = arith.constant 0 : i32
    return %arg0, %c0_i32 : i32, i32
  }
  func.func @transform_1(%arg0: i32) -> (i32, i32) {
    %c0_i32 = arith.constant 0 : i32
    %c0_i32_0 = arith.constant 0 : i32
    return %arg0, %c0_i32 : i32, i32
  }
  func.func @transform_2(%arg0: i32) -> (i32, i32) {
    %c0_i32 = arith.constant 0 : i32
    %c0_i32_0 = arith.constant 0 : i32
    %c0_i32_1 = arith.constant 0 : i32
    return %c0_i32, %c0_i32_0 : i32, i32
  }
  func.func @transform_3(%arg0: i32) -> (i32, i32) {
    %c0_i32 = arith.constant 0 : i32
    %c0_i32_0 = arith.constant 0 : i32
    %c0_i32_1 = arith.constant 0 : i32
    return %c0_i32, %c0_i32_0 : i32, i32
  }
  func.func @transform_4(%arg0: i32) -> (i32, i32) {
    %c0_i32 = arith.constant 0 : i32
    %c0_i32_0 = arith.constant 0 : i32
    %c0_i32_1 = arith.constant 0 : i32
    return %c0_i32, %c0_i32_0 : i32, i32
  }
  func.func @transform_5(%arg0: i32) -> (i32, i32) {
    %c0_i32 = arith.constant 0 : i32
    %c0_i32_0 = arith.constant 0 : i32
    %c0_i32_1 = arith.constant 0 : i32
    return %c0_i32, %c0_i32_0 : i32, i32
  }
  func.func @transform_6(%arg0: i32) -> (i32, i32) {
    %c0_i32 = arith.constant 0 : i32
    %c0_i32_0 = arith.constant 0 : i32
    %c0_i32_1 = arith.constant 0 : i32
    return %c0_i32, %c0_i32_0 : i32, i32
  }
  func.func @transform_7(%arg0: i32) -> (i32, i32) {
    %c0_i32 = arith.constant 0 : i32
    %c0_i32_0 = arith.constant 0 : i32
    %c0_i32_1 = arith.constant 0 : i32
    return %c0_i32, %c0_i32_0 : i32, i32
  }
  func.func @transform_8(%arg0: i32) -> (i32, i32) {
    %c0_i32 = arith.constant 0 : i32
    %c0_i32_0 = arith.constant 0 : i32
    %c0_i32_1 = arith.constant 0 : i32
    return %c0_i32, %c0_i32_0 : i32, i32
  }
  func.func @transform_9(%arg0: i32) -> (i32, i32) {
    %c0_i32 = arith.constant 0 : i32
    %c0_i32_0 = arith.constant 0 : i32
    return %arg0, %c0_i32 : i32, i32
  }
  func.func @transform_10(%arg0: i32) -> (i32, i32) {
    %c0_i32 = arith.constant 0 : i32
    %c0_i32_0 = arith.constant 0 : i32
    return %arg0, %c0_i32 : i32, i32
  }
}

</mosaic_0001>

<bundles_post_ra>
// kernel: _gail_forward_impl.1
= control target key start
LH: loop header
LB: loop body
LE: loop exit
PB: predicated region body
PF: predicated region fallthrough
CT: control target
= control target key end

     0   :  { %s1145_s15 = smov 0   ;;  %s1224_s0 = inlined_call_operand.vmem [shape: f32[64,16], index: 0, kind: input, shape index: {}]   ;;  %s1225_s1 = inlined_call_operand.vmem [shape: s32[64,1], index: 1, kind: input, shape index: {}]   ;;  %s1226_s2 = inlined_call_operand.vmem [shape: f32[16,32], index: 2, kind: input, shape index: {}]   ;;  %s1227_s3 = inlined_call_operand.vmem [shape: f32[8,32], index: 3, kind: input, shape index: {}]   ;;  %s1228_s4 = inlined_call_operand.vmem [shape: f32[1,32], index: 4, kind: input, shape index: {}]   ;;  %s1229_s5 = inlined_call_operand.vmem [shape: f32[32,32], index: 5, kind: input, shape index: {}]   ;;  %s1230_s6 = inlined_call_operand.vmem [shape: f32[1,32], index: 6, kind: input, shape index: {}]   ;;  %s1231_s7 = inlined_call_operand.vmem [shape: f32[1,32], index: 7, kind: input, shape index: {}]   ;;  %s1232_s8 = inlined_call_operand.<no memory space> [shape: f32[1,1], index: 8, kind: input, shape index: {}]   ;;  %s1233_s9 = inlined_call_operand.vmem [shape: f32[64,1], index: 9, kind: output, shape index: {0}]   ;;  %s1234_s10 = inlined_call_operand.vmem [shape: f32[64,1], index: 10, kind: output, shape index: {1}]  }
   0x1   :  { %v16_v0 = vstv %s1232_s8 }
   0x2   :  { %17 = vst [vmem:[#allocation2] sm:$0x1] %v16_v0 }
   0x3 LB: > { %s931_s16 = sadd.s32 4294967295, %s1083_s15   ;;  %p935_p0 = scmp.ge.s32.totalorder %s1083_s15, 1  ;;  %s1083_s15 = sphi %s1145_s15, %s23_s15  }
   0x4   : > { %p329_p1 = scmp.lt.s32.totalorder %s1083_s15, 3 }
   0x6   : > { %p330_p2 = pnand %p935_p0, %p329_p1 }
   0x7   : > { %s936_s17 = sshll.u32 (!%p330_p2), %s931_s16, 2  ;;  %v1085_v1 = vmov (!%p330_p2), 0   ;;  %v437_v6 = vld [vmem:[%s1227_s3] sm:$0xff] (!%p330_p2)  ;;  %v436_v8 = vld [vmem:[%s1226_s2 + $0x8] sm:$0xff] (!%p330_p2)  ;;  %v409_v10 = vlaneseq (!%p330_p2)  ;;  %vm438_vm0 = vcmask (!%p330_p2), 64512   ;;  %v1086_v14 = vmov (!%p330_p2), 0.0  }
   0x8   : > { %333 = sbr.rel (%p330_p2) target bundleno = 798 (0x31e), region = 56  ;;  %1044 = vset.pattern.permute.xlu1 (!%p330_p2), %v1085_v1  ;;  %1043 = vset.pattern.permute.xlu0 (!%p330_p2), %v1085_v1  ;;  %p378_p3 = scmp.lt.s32.totalorder (!%p330_p2), %s936_s17, 7  ;;  %v435_v7 = vld [vmem:[%s1226_s2] sm:$0xff] (!%p330_p2)  ;;  %vm536_vm5 = vcmask (!%p330_p2), 130048   ;;  %v650_v26 = vld [vmem:[%s1229_s5 + $0x8] sm:$0xff] (!%p330_p2)  ;;  %v651_v28 = vld [vmem:[%s1229_s5 + $0x10] sm:$0xff] (!%p330_p2) }
   0x9   : > { %985 = vmatprep.subr.mxu0 (!%p330_p2), %v437_v6  ;;  %v1017_v9 = vpack.c.bf16 (!%p330_p2), %v436_v8, %v435_v7  ;;  %v410_v11 = vand.u32 (!%p330_p2), 127, %v409_v10  ;;  %v649_v25 = vld [vmem:[%s1229_s5] sm:$0xff] (!%p330_p2)  ;;  %v652_v29 = vld [vmem:[%s1229_s5 + $0x18] sm:$0xff] (!%p330_p2)  ;;  %vm660_vm6 = vcmask (!%p330_p2), 261120   ;;  %vm796_vm7 = vcmask (!%p330_p2), 7168  }
   0xa   : > { %986 = vmatpush3.msra.mxu0 (!%p330_p2), %v437_v6  ;;  %v1021_v27 = vpack.c.bf16 (!%p330_p2), %v650_v26, %v649_v25  ;;  %v1025_v30 = vpack.c.bf16 (!%p330_p2), %v652_v29, %v651_v28  ;;  %v956_v31 = vld [vmem:[%s1228_s4] ss:$0 sm:$0xff] (!%p330_p2) }
   0xb   : > { %1018 = vmatprep.subr.bf16.mxu0 (!%p330_p2), %v1017_v9  ;;  %v957_v44 = vld [vmem:[%s1230_s6] ss:$0 sm:$0xff] (!%p330_p2) }
   0xc   : > { %1022 = vmatprep.subr.bf16.mxu1 (!%p330_p2), %v1021_v27  ;;  %v962_v53 = vld [vmem:[%s1231_s7] ss:$0 sm:$0xff] (!%p330_p2) }
   0xd   : > { %1024 = vmatpush3.bf16.msra.mxu1 (!%p330_p2), %v1021_v27 }
   0xe   : > { %1026 = vmatprep.subr.bf16.mxu1 (!%p330_p2), %v1025_v30 }
   0xf   : > { %s1236_s17 = smov (!%p378_p3, %s936_s17), 7 }
  0x10   : > { %s1153_s8 = sshll.u32 %s1236_s17, 3 }
  0x11   : > { %s387_s20 = scalar_lea.vmem %s1225_s1, %s1153_s8  ;;  %s381_s29 = scalar_lea.vmem %s1224_s0, %s1153_s8  ;;  %1028 = vmatpush3.bf16.msra.mxu1 %v1025_v30 }
  0x12   : > { %v407_v2 = vld [vmem:[%s387_s20 + $0x10] sm:$0xff]  ;;  %v405_v3 = vld [vmem:[%s387_s20] sm:$0xff]  ;;  %v408_v4 = vld [vmem:[%s387_s20 + $0x18] sm:$0xff]  ;;  %s399_s27 = scalar_lea.vmem %s1234_s10, %s1153_s8  ;;  %s393_s30 = scalar_lea.vmem %s1233_s9, %s1153_s8 }
  0x13   : > { %418 = vperm.xlu1 %1044, %v407_v2   ;;  %412 = vperm.xlu0 %1043, %v405_v3   ;;  %v406_v5 = vld [vmem:[%s387_s20 + $0x8] sm:$0xff]  ;;  %v401_v20 = vld [vmem:[%s381_s29] sm:$0xff]  ;;  %v403_v23 = vld [vmem:[%s381_s29 + $0x10] sm:$0xff] }
  0x14   : > { %v402_v22 = vld [vmem:[%s381_s29 + $0x8] sm:$0xff]  ;;  %v404_v24 = vld [vmem:[%s381_s29 + $0x18] sm:$0xff]  ;;  %v963_v2 = vld [vmem:[#allocation2] ss:$0 sm:$0xff] }
  0x17   : > { %421 = vperm.xlu1 %1044, %v408_v4   ;;  %415 = vperm.xlu0 %1043, %v406_v5  }
  0x92   : > { %v419_v12 = vpop.permute.xlu1 %418  ;;  %v413_v13 = vpop.permute.xlu0 %412 }
  0x93   : > { %vm423_vm1 = vcmp.eq.s32.totalorder %v410_v11, %v413_v13  ;;  %vm425_vm2 = vcmp.eq.s32.totalorder %v410_v11, %v419_v12 }
  0x94   : > { %v944_v15 = vsel %vm423_vm1, 1.0, %v1086_v14  ;;  %v946_v18 = vsel %vm425_vm2, 1.0, %v1086_v14 }
  0x95   : > { %987 = vmatprep.mubr.msk.f32.mxu0 %vm438_vm0, %v944_v15 }
  0x96   : > { %v422_v16 = vpop.permute.xlu1 %421  ;;  %v416_v17 = vpop.permute.xlu0 %415 }
  0x97   : > { %vm424_vm3 = vcmp.eq.s32.totalorder %v410_v11, %v416_v17  ;;  %vm426_vm4 = vcmp.eq.s32.totalorder %v410_v11, %v422_v16 }
  0x98   : > { %v945_v19 = vsel %vm424_vm3, 1.0, %v1086_v14  ;;  %v947_v21 = vsel %vm426_vm4, 1.0, %v1086_v14 }
  0x99   : > { %988 = vmatmul.mubr.msk.f32.vlgmr.msra.gmra.mrb[0].mxu0 %vm438_vm0, %v945_v19 }
  0x9a   : > { %1020 = vmatpush3.bf16.msra.mxu0 %v1017_v9  ;;  %990 = vmatprep.mubr.msk.f32.mxu0 %vm438_vm0, %v946_v18 }
  0x9d   : > { %991 = vmatmul.mubr.msk.f32.gmra.mrb[2].mxu0 %vm438_vm0, %v947_v21 }
  0x9e   : > { %997 = vmatprep.mubr.msk.f32.mxu0 %vm536_vm5, %v401_v20 }
  0xa1   : > { %998 = vmatmul.mubr.msk.f32.vlgmr.msra.gmra.mrb[0].mxu0 %vm536_vm5, %v402_v22 }
  0xa2   : > { %1000 = vmatprep.mubr.msk.f32.mxu0 %vm536_vm5, %v403_v23 }
  0xa5   : > { %1001 = vmatmul.mubr.msk.f32.gmra.mrb[2].mxu0 %vm536_vm5, %v404_v24 }
 0x174   : > { %v999_v32 = vpop.f32.mrb[0].mxu0 }
 0x175   : > { %v642_v33 = vadd.f32 %v999_v32, %v956_v31  ;;  %v615_v34 = vpop.f32.mrb[1].mxu0 }
 0x176   : > { %v641_v35 = vadd.f32 %v956_v31, %v615_v34 }
 0x178   : > { %1045 = vtanh.f32 %v641_v35  ;;  %v1002_v36 = vpop.f32.mrb[2].mxu0 }
 0x179   : > { %1047 = vtanh.f32 %v642_v33  ;;  %v644_v37 = vadd.f32 %v1002_v36, %v956_v31  ;;  %v625_v38 = vpop.f32.mrb[3].mxu0 }
 0x17a   : > { %v643_v39 = vadd.f32 %v956_v31, %v625_v38 }
 0x17c   : > { %1049 = vtanh.f32 %v643_v39 }
 0x17d   : > { %1051 = vtanh.f32 %v644_v37 }
 0x182   : > { %v1046_v40 = vpop.eup %1045 }
 0x183   : > { %v1048_v41 = vpop.eup %1047  ;;  %1011 = vmatprep.mubr.msk.f32.mxu1 %vm660_vm6, %v1046_v40 }
 0x184   : > { %1012 = vmatmul.mubr.msk.f32.vlgmr.msra.gmra.mrb[0].mxu1 %vm660_vm6, %v1048_v41 }
 0x186   : > { %v1050_v42 = vpop.eup %1049 }
 0x187   : > { %v1052_v43 = vpop.eup %1051  ;;  %1014 = vmatprep.mubr.msk.f32.mxu1 %vm660_vm6, %v1050_v42 }
 0x188   : > { %1015 = vmatmul.mubr.msk.f32.gmra.mrb[2].mxu1 %vm660_vm6, %v1052_v43 }
 0x257   : > { %v1013_v45 = vpop.f32.mrb[0].mxu1 }
 0x258   : > { %v745_v46 = vadd.f32 %v1013_v45, %v957_v44  ;;  %v739_v47 = vpop.f32.mrb[1].mxu1 }
 0x259   : > { %v740_v48 = vadd.f32 %v957_v44, %v739_v47 }
 0x25a   : > { %1053 = vtanh.f32 %v745_v46 }
 0x25b   : > { %1055 = vtanh.f32 %v740_v48  ;;  %v1016_v49 = vpop.f32.mrb[2].mxu1 }
 0x25c   : > { %v755_v50 = vadd.f32 %v1016_v49, %v957_v44  ;;  %v749_v51 = vpop.f32.mrb[3].mxu1 }
 0x25d   : > { %v750_v52 = vadd.f32 %v957_v44, %v749_v51 }
 0x25e   : > { %1057 = vtanh.f32 %v755_v50 }
 0x25f   : > { %1059 = vtanh.f32 %v750_v52 }
 0x264   : > { %v1054_v54 = vpop.eup %1053 }
 0x265   : > { %v1056_v55 = vpop.eup %1055  ;;  %v770_v56 = vmul.f32 %v1054_v54, %v962_v53 }
 0x266   : > { %v769_v57 = vmul.f32 %v1056_v55, %v962_v53 }
 0x267   : > { %v776_v58 = vsel %vm660_vm6, %v770_v56, 0.0 }
 0x268   : > { %v1058_v59 = vpop.eup %1057  ;;  %777 = vadd.xlane.f32.xlu1 %v776_v58  ;;  %v773_v60 = vsel %vm660_vm6, %v769_v57, 0.0 }
 0x269   : > { %v1060_v61 = vpop.eup %1059  ;;  %774 = vadd.xlane.f32.xlu0 %v773_v60  ;;  %v772_v0 = vmul.f32 %v1058_v59, %v962_v53 }
 0x26a   : > { %v771_v62 = vmul.f32 %v1060_v61, %v962_v53 }
 0x26b   : > { %v782_v1 = vsel %vm660_vm6, %v772_v0, 0.0 }
 0x26c   : > { %v779_v63 = vsel %vm660_vm6, %v771_v62, 0.0 }
 0x26d   : > { %780 = vadd.xlane.f32.xlu0 %v779_v63 }
 0x271   : > { %783 = vadd.xlane.f32.xlu0 %v782_v1 }
 0x2f5   : > { %v778_v3 = vpop.xlane.xlu1 %777 }
 0x2f6   : > { %v793_v4 = vadd.f32 %v963_v2, %v778_v3  ;;  %v775_v5 = vpop.xlane.xlu0 %774 }
 0x2f7   : > { %v792_v6 = vadd.f32 %v963_v2, %v775_v5 }
 0x2f8   : > { %v802_v7 = vsub.f32 0.0, %v793_v4  ;;  %798 = vst.msk [vmem:[%s399_s27 + $0x8] sm:$0xff] %vm796_vm7, %v793_v4 }
 0x2f9   : > { %797 = vst.msk [vmem:[%s399_s27] sm:$0xff] %vm796_vm7, %v792_v6  ;;  %v801_v8 = vsub.f32 0.0, %v792_v6 }
 0x2fa   : > { %v807_v9 = vmul.f32 1.442695, %v802_v7  ;;  %v781_v10 = vpop.xlane.xlu0 %780 }
 0x2fb   : > { %v805_v11 = vmul.f32 1.442695, %v801_v8  ;;  %v794_v12 = vadd.f32 %v963_v2, %v781_v10 }
 0x2fc   : > { %1061 = vpow2.f32 %v807_v9 }
 0x2fd   : > { %1063 = vpow2.f32 %v805_v11  ;;  %799 = vst.msk [vmem:[%s399_s27 + $0x10] sm:$0xff] %vm796_vm7, %v794_v12  ;;  %v803_v13 = vsub.f32 0.0, %v794_v12 }
 0x2fe   : > { %v784_v14 = vpop.xlane.xlu0 %783 }
 0x2ff   : > { %v809_v15 = vmul.f32 1.442695, %v803_v13  ;;  %v795_v16 = vadd.f32 %v963_v2, %v784_v14 }
 0x301   : > { %1065 = vpow2.f32 %v809_v15  ;;  %800 = vst.msk [vmem:[%s399_s27 + $0x18] sm:$0xff] %vm796_vm7, %v795_v16  ;;  %v804_v17 = vsub.f32 0.0, %v795_v16 }
 0x303   : > { %v811_v18 = vmul.f32 1.442695, %v804_v17 }
 0x305   : > { %1067 = vpow2.f32 %v811_v18 }
 0x306   : > { %v1062_v19 = vpop.eup %1061 }
 0x307   : > { %v1064_v20 = vpop.eup %1063  ;;  %v814_v21 = vadd.f32 1.0, %v1062_v19 }
 0x308   : > { %v813_v22 = vadd.f32 1.0, %v1064_v20 }
 0x30a   : > { %1069 = vrcp.f32 %v813_v22 }
 0x30b   : > { %v1066_v23 = vpop.eup %1065  ;;  %1071 = vrcp.f32 %v814_v21 }
 0x30c   : > { %v815_v24 = vadd.f32 1.0, %v1066_v23 }
 0x30e   : > { %1073 = vrcp.f32 %v815_v24 }
 0x30f   : > { %v1068_v25 = vpop.eup %1067 }
 0x310   : > { %v816_v26 = vadd.f32 1.0, %v1068_v25 }
 0x312   : > { %1075 = vrcp.f32 %v816_v26 }
 0x314   : > { %v1070_v27 = vpop.eup %1069 }
 0x315   : > { %v1072_v28 = vpop.eup %1071  ;;  %825 = vst.msk [vmem:[%s393_s30] sm:$0xff] %vm796_vm7, %v1070_v27 }
 0x316   : > { %826 = vst.msk [vmem:[%s393_s30 + $0x8] sm:$0xff] %vm796_vm7, %v1072_v28 }
 0x318   : > { %v1074_v29 = vpop.eup %1073 }
 0x319   : > { %827 = vst.msk [vmem:[%s393_s30 + $0x10] sm:$0xff] %vm796_vm7, %v1074_v29 }
 0x31c   : > { %v1076_v30 = vpop.eup %1075 }
 0x31d   : > { %828 = vst.msk [vmem:[%s393_s30 + $0x18] sm:$0xff] %vm796_vm7, %v1076_v30 }
 0x31e PF: > { %s23_s15 = sadd.s32 1, %s1083_s15  }
 0x31f   : > { %p20_p4 = scmp.ge.s32.totalorder %s23_s15, 4  }
 0x321   :  { %22 = sbr.rel (!%p20_p4) target bundleno = 3 (0x3), region = 101 }

</bundles_post_ra>
